<compile_context>
chip_gen: v5e
topology: v5e:2x2
jax: 0.10.0
libtpu: 0.0.40
codegen_flags: <defaults>
</compile_context>

<pallas_src>
import jax
import jax.numpy as jnp
from jax.experimental import pallas as pl
from jax.experimental.pallas import tpu as pltpu


_LANE = 128      # vreg lane width  (last-dim alignment)
_SUBLANE = 8     # vreg sublane width (second-to-last-dim alignment, f32)


def _round_up(x, m):
    return (x + m - 1) // m * m


def _cdiv(a, b):
    return (a + b - 1) // b


def _chip_config():
    """Per-generation tile defaults and VMEM budgets."""
    kind = ""
    try:
        kind = jax.devices()[0].device_kind.lower()
    except Exception:
        pass
    if "v7" in kind:
        # v7x: 64 MiB physical VMEM per TensorCore -> cap the double-buffered
        # footprint well below it and leave headroom for compiler scratch.
        return dict(vmem_limit=48 << 20, budget=36 << 20,
                    tm=256, tn=512, tk=1024, megacore=True)
    # v5e / v6e (and unknown): 128 MiB physical VMEM, 1 TensorCore per chip.
    return dict(vmem_limit=96 << 20, budget=64 << 20,
                tm=512, tn=1024, tk=1024, megacore=False)


def _make_kernels(compute_dtype):
    """Kernel bodies closed over the (optional) in-kernel compute cast."""

    def _cast(v):
        if compute_dtype is not None and v.dtype != compute_dtype:
            return v.astype(compute_dtype)   # VPU cast, rides under the MXU
        return v

    def noacc(x_ref, w_ref, o_ref):
        # Single K step (2-D grid): write the MXU result straight to the tile.
        o_ref[...] = jnp.dot(
            _cast(x_ref[...]), _cast(w_ref[...]),
            preferred_element_type=jnp.float32,
        ).astype(o_ref.dtype)

    def acc_into_out(x_ref, w_ref, o_ref):
        # Multi-K, f32 output: accumulate directly into the resident out tile.
        @pl.when(pl.program_id(2) == 0)
        def _():
            o_ref[...] = jnp.zeros_like(o_ref)

        o_ref[...] += jnp.dot(
            _cast(x_ref[...]), _cast(w_ref[...]),
            preferred_element_type=jnp.float32,
        )

    def acc_scratch(x_ref, w_ref, o_ref, acc_ref):
        # Multi-K, non-f32 output: f32 VMEM accumulator, cast once at the end.
        @pl.when(pl.program_id(2) == 0)
        def _():
            acc_ref[...] = jnp.zeros_like(acc_ref)

        acc_ref[...] += jnp.dot(
            _cast(x_ref[...]), _cast(w_ref[...]),
            preferred_element_type=jnp.float32,
        )

        @pl.when(pl.program_id(2) == pl.num_programs(2) - 1)
        def _():
            o_ref[...] = acc_ref[...].astype(o_ref.dtype)

    return noacc, acc_into_out, acc_scratch


def simple_ne_layer(inputs, weights, *, tm=None, tn=None, tk=None,
                    compute_dtype=jnp.bfloat16, force_pallas=False):
    """out = inputs @ weights on the MXU via a tiled, pipelined Pallas kernel.

    compute_dtype: MXU input dtype (default bf16; accumulation is always f32).
                   Pass jnp.float32 for bit-faithful f32 matmul semantics.
    """
    M, K = inputs.shape
    K2, N = weights.shape
    assert K == K2, f"contraction mismatch: {K} vs {K2}"
    out_dtype = jnp.result_type(inputs.dtype, weights.dtype)

    # Tiny layers: a (1,1)-grid pallas_call is dominated by fixed launch/DMA
    # overhead -> let XLA's fused matmul handle them.
    if not force_pallas and (M * K * N) < (128 ** 3):
        return jnp.matmul(inputs, weights).astype(out_dtype)

    cfg = _chip_config()
    in_itemsize = jnp.dtype(inputs.dtype).itemsize
    out_itemsize = jnp.dtype(out_dtype).itemsize

    # ---------------- Tile selection ----------------
    tm_auto, tn_auto, tk_auto = tm is None, tn is None, tk is None
    if tm_auto:
        tm = M if M <= cfg["tm"] else cfg["tm"]
    if tn_auto:
        tn = N if N <= cfg["tn"] else cfg["tn"]

    # v7x megacore guard: never leave a TensorCore idle on a 1-tile grid.
    if (cfg["megacore"] and tm_auto and tn_auto
            and _cdiv(M, tm) * _cdiv(N, tn) == 1 and N > _LANE):
        tn = _round_up(_cdiv(N, 2), _LANE)

    # Single-K specialization: whenever the whole K panel (double-buffered)
    # fits the budget, do a single K step (no accumulator, no K padding).
    def _panel_bytes(tk_):
        return 2 * (tm * tk_ + tk_ * tn) * in_itemsize + 2 * tm * tn * out_itemsize

    if tk_auto:
        single_k = _panel_bytes(K) <= cfg["budget"]
        tk = K if single_k else cfg["tk"]
    else:
        single_k = tk >= K
        if single_k:
            tk = K

    acc_in_out = jnp.dtype(out_dtype) == jnp.dtype(jnp.float32)

    def _footprint():
        f = 2 * (tm * tk + tk * tn) * in_itemsize + 2 * tm * tn * out_itemsize
        if (not single_k) and (not acc_in_out):
            f += tm * tn * 4        # f32 accumulator scratch
        return f

    # Rarely triggers with the per-chip defaults; shrinks auto-picked tiles.
    while _footprint() > cfg["budget"]:
        if tk_auto and not single_k and tk > _LANE and tk % (2 * _LANE) == 0:
            tk //= 2
            continue
        if tn_auto and tn > _LANE and tn % (2 * _LANE) == 0:
            tn //= 2
            continue
        if tm_auto and tm > _SUBLANE and tm % (2 * _SUBLANE) == 0:
            tm //= 2
            continue
        break
    assert _footprint() <= cfg["vmem_limit"], (
        f"tile footprint {_footprint()} exceeds VMEM limit {cfg['vmem_limit']}")

    # (8,128) BlockSpec legality (full-extent blocks are always legal).
    assert tm == M or tm % _SUBLANE == 0, f"tm={tm} must be multiple of 8 or == M"
    assert tn == N or tn % _LANE == 0, f"tn={tn} must be multiple of 128 or == N"
    assert tk == K or tk % _LANE == 0, f"tk={tk} must be multiple of 128 or == K"

    # ---------------- K padding (only on the streaming multi-K path) --------
    x, w = inputs, weights
    if single_k:
        k_pad = K
    else:
        k_pad = _round_up(K, tk)
        if k_pad != K:   # zero padding of the contraction dim is exact
            x = jnp.pad(x, ((0, 0), (0, k_pad - K)))
            w = jnp.pad(w, ((0, k_pad - K), (0, 0)))

    noacc, acc_out, acc_scr = _make_kernels(compute_dtype)

    cost = pl.CostEstimate(
        flops=2 * M * N * k_pad,
        transcendentals=0,
        bytes_accessed=(M * k_pad + k_pad * N) * in_itemsize + M * N * out_itemsize,
    )

    if single_k:
        grid = (_cdiv(M, tm), _cdiv(N, tn))
        grid_spec = pltpu.PrefetchScalarGridSpec(
            num_scalar_prefetch=0,
            grid=grid,
            in_specs=[
                pl.BlockSpec((tm, K), lambda i, j: (i, 0)),
                pl.BlockSpec((K, tn), lambda i, j: (0, j)),
            ],
            out_specs=pl.BlockSpec((tm, tn), lambda i, j: (i, j)),
            scratch_shapes=[],
        )
        kernel = noacc
        dims = ("parallel", "parallel")
    else:
        grid = (_cdiv(M, tm), _cdiv(N, tn), k_pad // tk)
        kernel = acc_out if acc_in_out else acc_scr
        scratch = [] if acc_in_out else [pltpu.VMEM((tm, tn), jnp.float32)]
        grid_spec = pltpu.PrefetchScalarGridSpec(
            num_scalar_prefetch=0,
            grid=grid,
            in_specs=[
                pl.BlockSpec((tm, tk), lambda i, j, k: (i, k)),
                pl.BlockSpec((tk, tn), lambda i, j, k: (k, j)),
            ],
            out_specs=pl.BlockSpec((tm, tn), lambda i, j, k: (i, j)),
            scratch_shapes=scratch,
        )
        kernel = kernel
        dims = ("parallel", "parallel", "arbitrary")

    out = pl.pallas_call(
        kernel,
        out_shape=jax.ShapeDtypeStruct((M, N), out_dtype),
        grid_spec=grid_spec,
        compiler_params=pltpu.CompilerParams(
            dimension_semantics=dims,
            vmem_limit_bytes=cfg["vmem_limit"],
        ),
        cost_estimate=cost,
    )(x, w)
    return out


if __name__ == "__main__":
    # Shapes consistent with the module:
    #   output_size = 16 (contraction dim), input_size = 32 (result dim), batch = 8
    batch, output_size, input_size = 8, 16, 32

    key = jax.random.PRNGKey(0)
    k_in, k_w, k_x2, k_w2 = jax.random.split(key, 4)

    inputs = jax.random.normal(k_in, (batch, output_size), dtype=jnp.float32)
    # Deterministic stand-in for torch.randn(output_size, input_size)
    weights = jax.random.normal(k_w, (output_size, input_size), dtype=jnp.float32)
    ref = jnp.matmul(inputs, weights)

    # 1) Exact f32 MXU path on the module's native small shape (force Pallas;
    #    normally such a tiny layer would take the XLA fallback).
    out = simple_ne_layer(inputs, weights, compute_dtype=jnp.float32,
                          force_pallas=True)
    out = jax.block_until_ready(out)
    assert out.shape == (batch, input_size)
    assert jnp.allclose(out, ref, atol=1e-5, rtol=1e-5)

    # 2) Default bf16-compute path (f32 accumulation) on the same shape.
    out_bf = jax.block_until_ready(
        simple_ne_layer(inputs, weights, force_pallas=True))
    assert jnp.allclose(out_bf, ref, atol=5e-2, rtol=5e-2)

    # 3) A slightly larger run exercising the tiled multi-K path: K zero
    #    padding (500 -> 512), masked M/N edge blocks, accumulate-into-output.
    M2, K2, N2 = 200, 500, 320
    x2 = jax.random.normal(k_x2, (M2, K2), dtype=jnp.float32)
    w2 = jax.random.normal(k_w2, (K2, N2), dtype=jnp.float32)
    out2 = jax.block_until_ready(
        simple_ne_layer(x2, w2, tm=128, tn=128, tk=128, force_pallas=True))
    ref2 = jnp.matmul(x2.astype(jnp.bfloat16), w2.astype(jnp.bfloat16),
                      preferred_element_type=jnp.float32)
    assert out2.shape == (M2, N2)
    assert jnp.allclose(out2, ref2, atol=1e-2, rtol=1e-2)

    print("KERNEL_OK")
</pallas_src>

<mosaic_0001>
module attributes {stable_mosaic.version = 11 : i64} {
  func.func @noacc(%arg0: i32, %arg1: i32, %arg2: memref<8x16xf32, #tpu.memory_space<vmem>>, %arg3: memref<16x32xf32, #tpu.memory_space<vmem>>, %arg4: memref<8x32xf32, #tpu.memory_space<vmem>>) attributes {dimension_semantics = [#tpu.dimension_semantics<parallel>, #tpu.dimension_semantics<parallel>], iteration_bounds = array<i64: 1, 1>, scalar_prefetch = 0 : i64, scratch_operands = 0 : i64, tpu.core_type = #tpu.core_type<tc>, window_params = [{transform_indices = @transform_0, window_bounds = array<i64: 8, 16>}, {transform_indices = @transform_1, window_bounds = array<i64: 16, 32>}, {transform_indices = @transform_2, window_bounds = array<i64: 8, 32>}]} {
    %c0 = arith.constant 0 : index
    %c0_0 = arith.constant 0 : index
    %0 = vector.load %arg2[%c0, %c0_0] : memref<8x16xf32, #tpu.memory_space<vmem>>, vector<8x16xf32>
    %c0_1 = arith.constant 0 : index
    %c0_2 = arith.constant 0 : index
    %1 = vector.load %arg3[%c0_1, %c0_2] : memref<16x32xf32, #tpu.memory_space<vmem>>, vector<16x32xf32>
    %cst = arith.constant dense<0.000000e+00> : vector<8x32xf32>
    %2 = tpu.matmul %0, %1, %cst {dimension_numbers = #tpu.dot_dimension_numbers<[1], [0], [0], [1], [0, 0, 1, 1], [], []>} : vector<8x16xf32>, vector<16x32xf32>, vector<8x32xf32> -> vector<8x32xf32>
    %c0_3 = arith.constant 0 : index
    %c0_4 = arith.constant 0 : index
    %3 = vector.load %arg4[%c0_3, %c0_4] : memref<8x32xf32, #tpu.memory_space<vmem>>, vector<8x32xf32>
    tpu.vector_store %arg4[%c0_3, %c0_4], %2 {strides = array<i32>} : memref<8x32xf32, #tpu.memory_space<vmem>>, vector<8x32xf32>,
    return
  }
  func.func @transform_0(%arg0: i32, %arg1: i32) -> (i32, i32) {
    %c0_i32 = arith.constant 0 : i32
    %c0_i32_0 = arith.constant 0 : i32
    return %arg0, %c0_i32 : i32, i32
  }
  func.func @transform_1(%arg0: i32, %arg1: i32) -> (i32, i32) {
    %c0_i32 = arith.constant 0 : i32
    %c0_i32_0 = arith.constant 0 : i32
    return %c0_i32, %arg1 : i32, i32
  }
  func.func @transform_2(%arg0: i32, %arg1: i32) -> (i32, i32) {
    %c0_i32 = arith.constant 0 : i32
    return %arg0, %arg1 : i32, i32
  }
}

</mosaic_0001>

<bundles_post_ra>
// kernel: tpu_custom_call.1
= control target key start
LH: loop header
LB: loop body
LE: loop exit
PB: predicated region body
PF: predicated region fallthrough
CT: control target
= control target key end

     0   :  { %7 = vsyncpa [#allocation3], 0  ;;  %s202_s0 = inlined_call_operand.hbm [shape: f32[8,16], index: 0, kind: input, shape index: {}]   ;;  %s203_s1 = inlined_call_operand.hbm [shape: f32[16,32], index: 1, kind: input, shape index: {}]   ;;  %s204_s2 = inlined_call_operand.hbm [shape: f32[8,32], index: 2, kind: output, shape index: {}]  }
   0x1   :  { %8 = vsyncpa [#allocation6], 0 }
   0x2   :  { %9 = vsyncpa [#allocation4], 0  ;;  %s15_s11 = sshll.u32 %s202_s0, 4  ;;  %s173_s12 = smov [#allocation2]   ;;  %s16_s11 = int_to_ptr.hbm [resolvable:$true] %s15_s11 }
   0x3   :  { %s17_s13 = sshll.u32 %s173_s12, 4  ;;  %s25_s16 = sshll.u32 %s203_s1, 4  ;;  %s18_s13 = int_to_ptr.vmem [resolvable:$true] %s17_s13  ;;  %s26_s16 = int_to_ptr.hbm [resolvable:$true] %s25_s16 }
   0x4   :  { %20 = dma.hbm_to_vmem [thread:$0]  %s16_s11, 128, %s18_s13, [#allocation3]  }
   0x5   :  { %s174_s17 = smov [#allocation5]   ;;  %s175_s19 = smov 128  }
   0x6   :  { %s27_s18 = sshll.u32 %s174_s17, 4  ;;  %s176_s20 = smov 8   ;;  %s28_s18 = int_to_ptr.vmem [resolvable:$true] %s27_s18 }
   0x7   :  { %33 = dma.hbm_to_vmem [thread:$0]  %s26_s16, 256, %s28_s18, [#allocation6], %s175_s19, %s175_s19, %s176_s20  }
   0x8   :  { %167 = dma.done.wait [#allocation3], 128  }
   0x9   :  { %168 = vsyncadd [#allocation3], 4294967168 }
   0xa   :  { %169 = dma.done.wait [#allocation6], 256  }
   0xb   :  { %170 = vsyncadd [#allocation6], 4294967040  ;;  %v44_v0 = vld [vmem:[#allocation5 + $0x8] sm:$0xff]  ;;  %v43_v1 = vld [vmem:[#allocation5] sm:$0xff]  ;;  %vm45_vm0 = vcmask 130048   ;;  %s177_s0 = smov [#allocation7]  }
   0xc   :  { %63 = vmatpush.msra.mxu0 %v44_v0  ;;  %v42_v2 = vld [vmem:[#allocation2] sm:$0xff]  ;;  %s76_s1 = sshll.u32 %s177_s0, 4  ;;  %s78_s23 = sshll.u32 %s204_s2, 4  ;;  %vm69_vm1 = vcmask 261120   ;;  %s77_s1 = int_to_ptr.vmem [resolvable:$true] %s76_s1  ;;  %s79_s23 = int_to_ptr.hbm [resolvable:$true] %s78_s23 }
   0xe   :  { %64 = vmatpush.msra.mxu0 %v43_v1 }
   0xf   :  { %89 = vmatmul.msk.f32.vlgmr.msra.gmra.mxu0 %vm45_vm0, %v42_v2 }
  0x8c   :  { %v66_v3 = vpop.f32.mrf.mxu0 }
  0x8d   :  { %70 = vst.msk [vmem:[#allocation7] sm:$0xff] %vm69_vm1, %v66_v3 }
  0x8e   :  { %81 = dma.vmem_to_hbm [thread:$0]  %s77_s1, 128, %s79_s23, [#allocation4]  }
  0x8f   :  { %171 = dma.done.wait [#allocation4], 128  }
  0x90   :  { %172 = vsyncadd [#allocation4], 4294967168 }
  0x91   :  { %86 = vsyncpa [#allocation3], 1 }
  0x92   :  { %87 = vsyncpa [#allocation6], 1 }
  0x93   :  { %88 = vsyncpa [#allocation4], 1 }

</bundles_post_ra>
